<compile_context>
chip_gen: v6e
topology: v6e:2x2x1
jax: 0.10.0
libtpu: 0.0.40
codegen_flags: <defaults>
</compile_context>

<pallas_src>
import functools

import jax
import jax.numpy as jnp
from jax import lax
from jax.experimental import pallas as pl
from jax.experimental.pallas import tpu as pltpu


_ACC_BUDGET_BYTES = 64 * 1024   # keep the live accumulator ~1/4 of the vreg file


def _round_up(x, m):
    return (x + m - 1) // m * m


def _ssd_head_kernel(x_ref, w_ref, o_ref, *, KH, KW, Wp, col_blocks):
    # x_ref: (1, C, L_in)    zero-padded input, spatially flattened (row len Wp)
    # w_ref: (KH*KW, OCt, C) one (OCt, C) weight matrix per tap, both heads fused
    # o_ref: (1, OCt, S_out) dense conv response, flattened spatial (row len Wp)
    oct_ = o_ref.shape[1]
    for q0, width in col_blocks:              # static unroll, bounded accumulator
        acc = jnp.zeros((oct_, width), jnp.float32)
        for kh in range(KH):
            for kw in range(KW):
                off = q0 + kh * Wp + kw                       # static offset
                rhs = x_ref[0, :, off:off + width]            # (C, width)
                acc = acc + jnp.dot(w_ref[kh * KW + kw], rhs,
                                    preferred_element_type=jnp.float32)
        # q0 and width are multiples of 128 -> unmasked, lane-dense stores
        o_ref[0, :, q0:q0 + width] = acc.astype(o_ref.dtype)


@functools.partial(jax.jit, static_argnames=("stride", "pad"))
def ssd_fused_conv(x_nchw, w_oihw, *, stride, pad):
    """Bias-free 2D conv, NCHW in / NCHW out, OIHW weights (both heads fused)."""
    N, C, H, W = x_nchw.shape
    OCt, wc, KH, KW = w_oihw.shape
    assert wc == C
    Hp, Wp = H + 2 * pad, W + 2 * pad
    OHd = Hp - KH + 1                           # dense (stride-1) output rows
    OH = (H + 2 * pad - KH) // stride + 1
    OW = (W + 2 * pad - KW) // stride + 1

    S_out = _round_up(OHd * Wp, 128)                        # lane-dense output
    L_in = _round_up((KH - 1) * Wp + (KW - 1) + S_out, 128)

    # Zero-pad spatially, flatten rows, pad the flat tail.  Under jit XLA fuses
    # this into a single copy producing the kernel's input layout.
    x_flat = jnp.pad(x_nchw, ((0, 0), (0, 0), (pad, pad), (pad, pad)))
    x_flat = x_flat.reshape(N, C, Hp * Wp)
    x_flat = jnp.pad(x_flat, ((0, 0), (0, 0), (0, L_in - Hp * Wp)))

    # (OCt, C, KH, KW) -> (KH*KW, OCt, C): one (OCt, C) matrix per tap.
    w_taps = jnp.transpose(w_oihw, (2, 3, 0, 1)).reshape(KH * KW, OCt, C)

    # Static, 128-aligned column blocking of the flattened spatial dimension so
    # the f32 accumulator stays in vregs even for large feature maps.
    blk = max(128, (_ACC_BUDGET_BYTES // (OCt * 4)) // 128 * 128)
    blk = min(blk, S_out)
    col_blocks = tuple((q0, min(blk, S_out - q0))
                       for q0 in range(0, S_out, blk))

    kernel = functools.partial(_ssd_head_kernel, KH=KH, KW=KW, Wp=Wp,
                               col_blocks=col_blocks)

    dense = pl.pallas_call(
        kernel,
        out_shape=jax.ShapeDtypeStruct((N, OCt, S_out), x_nchw.dtype),
        grid_spec=pltpu.PrefetchScalarGridSpec(
            num_scalar_prefetch=0,
            grid=(N,),
            in_specs=[
                pl.BlockSpec((1, C, L_in), lambda n: (n, 0, 0)),
                pl.BlockSpec((KH * KW, OCt, C), lambda n: (0, 0, 0)),
            ],
            out_specs=pl.BlockSpec((1, OCt, S_out), lambda n: (n, 0, 0)),
        ),
        compiler_params=pltpu.CompilerParams(
            dimension_semantics=("parallel",)),
    )(x_flat, w_taps)

    # Crop the dense response to the strided conv output (output is the small
    # tensor, so this is cheap and replaces any NHWC->NCHW transpose).
    dense = dense[:, :, :OHd * Wp].reshape(N, OCt, OHd, Wp)
    return dense[:, :, :(OH - 1) * stride + 1:stride,
                 :(OW - 1) * stride + 1:stride]


def kaiming_uniform_oihw(key, OC, C, KH, KW, dtype=jnp.float32):
    # PyTorch nn.init.kaiming_uniform_ (a=0, fan_in mode): bound = sqrt(6/fan_in)
    fan_in = C * KH * KW
    bound = (6.0 / fan_in) ** 0.5
    return jax.random.uniform(key, (OC, C, KH, KW), dtype, -bound, bound)


class SSDHeadPallas:
    """JAX/Pallas equivalent of the PyTorch SSDHead (two bias-free conv heads)."""

    def __init__(self, fmap_chan, priors_cnt, classes_cnt, kernel, stride, pad,
                 key=jax.random.PRNGKey(0)):
        self.stride, self.pad = stride, pad
        self.clf_chan = classes_cnt * priors_cnt
        self.rgr_chan = 4 * priors_cnt
        k_clf, k_rgr = jax.random.split(key)
        self.w_clf = kaiming_uniform_oihw(k_clf, self.clf_chan, fmap_chan,
                                          kernel, kernel)
        self.w_rgr = kaiming_uniform_oihw(k_rgr, self.rgr_chan, fmap_chan,
                                          kernel, kernel)
        # Both heads fused along the output-channel axis -> one kernel call.
        self.w_fused = jnp.concatenate([self.w_clf, self.w_rgr], axis=0)

    def __call__(self, x_nchw):
        out = ssd_fused_conv(x_nchw, self.w_fused,
                             stride=self.stride, pad=self.pad)
        return out[:, :self.clf_chan], out[:, self.clf_chan:]


def _reference_conv(x_nchw, w_oihw, stride, pad):
    # Pure-JAX (XLA) reference for correctness checking.
    return lax.conv_general_dilated(
        x_nchw, w_oihw,
        window_strides=(stride, stride),
        padding=((pad, pad), (pad, pad)),
        dimension_numbers=("NCHW", "OIHW", "NCHW"),
        precision=lax.Precision.HIGHEST)


if __name__ == "__main__":
    key = jax.random.PRNGKey(0)

    configs = [
        # primary config (matches the suggested small shapes)
        dict(N=2, fmap_chan=4, priors=4, classes=3, k=3, s=1, p=1, H=16, W=16),
        # exercises multi-column-block accumulation and batch=1
        dict(N=1, fmap_chan=8, priors=4, classes=3, k=3, s=1, p=1, H=32, W=32),
        # exercises the strided (dense-then-crop) path
        dict(N=2, fmap_chan=4, priors=2, classes=5, k=3, s=2, p=1, H=16, W=16),
    ]

    for cfg in configs:
        key, k_x, k_w = jax.random.split(key, 3)
        x = jax.random.normal(
            k_x, (cfg["N"], cfg["fmap_chan"], cfg["H"], cfg["W"]), jnp.float32)

        head = SSDHeadPallas(cfg["fmap_chan"], cfg["priors"], cfg["classes"],
                             cfg["k"], cfg["s"], cfg["p"], key=k_w)

        clf, rgr = head(x)
        clf = jax.block_until_ready(clf)
        rgr = jax.block_until_ready(rgr)

        clf_ref = _reference_conv(x, head.w_clf, cfg["s"], cfg["p"])
        rgr_ref = _reference_conv(x, head.w_rgr, cfg["s"], cfg["p"])

        assert clf.shape == clf_ref.shape, (clf.shape, clf_ref.shape)
        assert rgr.shape == rgr_ref.shape, (rgr.shape, rgr_ref.shape)
        assert clf.shape[1] == cfg["classes"] * cfg["priors"]
        assert rgr.shape[1] == 4 * cfg["priors"]
        assert jnp.allclose(clf, clf_ref, atol=2e-4, rtol=2e-4), cfg
        assert jnp.allclose(rgr, rgr_ref, atol=2e-4, rtol=2e-4), cfg

    print("KERNEL_OK")
</pallas_src>

<mosaic_0001>
module attributes {stable_mosaic.version = 11 : i64} {
  func.func @_ssd_head_kernel(%arg0: i32, %arg1: memref<1x4x512xf32, #tpu.memory_space<vmem>>, %arg2: memref<9x28x4xf32, #tpu.memory_space<vmem>>, %arg3: memref<1x28x384xf32, #tpu.memory_space<vmem>>) attributes {dimension_semantics = [#tpu.dimension_semantics<parallel>], iteration_bounds = array<i64: 2>, scalar_prefetch = 0 : i64, scratch_operands = 0 : i64, tpu.core_type = #tpu.core_type<tc>, window_params = [{transform_indices = @transform_0, window_bounds = array<i64: 1, 4, 512>}, {pipeline_mode = #tpu.pipeline_mode<synchronous>, transform_indices = @transform_1, window_bounds = array<i64: 9, 28, 4>}, {transform_indices = @transform_2, window_bounds = array<i64: 1, 28, 384>}]} {
    %cst = arith.constant 0.000000e+00 : f32
    %0 = vector.broadcast %cst : f32 to vector<28x384xf32>
    %c0 = arith.constant 0 : index
    %c0_0 = arith.constant 0 : index
    %c0_1 = arith.constant 0 : index
    %1 = vector.load %arg1[%c0, %c0_0, %c0_1] : memref<1x4x512xf32, #tpu.memory_space<vmem>>, vector<1x4x384xf32>
    %2 = vector.shape_cast %1 : vector<1x4x384xf32> to vector<4x384xf32>
    %c0_2 = arith.constant 0 : index
    %c0_3 = arith.constant 0 : index
    %c0_4 = arith.constant 0 : index
    %3 = vector.load %arg2[%c0_2, %c0_3, %c0_4] : memref<9x28x4xf32, #tpu.memory_space<vmem>>, vector<1x28x4xf32>
    %4 = vector.shape_cast %3 : vector<1x28x4xf32> to vector<28x4xf32>
    %cst_5 = arith.constant dense<0.000000e+00> : vector<28x384xf32>
    %5 = tpu.matmul %4, %2, %cst_5 {dimension_numbers = #tpu.dot_dimension_numbers<[1], [0], [0], [1], [0, 0, 1, 1], [], []>} : vector<28x4xf32>, vector<4x384xf32>, vector<28x384xf32> -> vector<28x384xf32>
    %6 = arith.addf %0, %5 : vector<28x384xf32>
    %c0_6 = arith.constant 0 : index
    %c0_7 = arith.constant 0 : index
    %c1 = arith.constant 1 : index
    %7 = vector.load %arg1[%c0_6, %c0_7, %c1] : memref<1x4x512xf32, #tpu.memory_space<vmem>>, vector<1x4x384xf32>
    %8 = vector.shape_cast %7 : vector<1x4x384xf32> to vector<4x384xf32>
    %c1_8 = arith.constant 1 : index
    %c0_9 = arith.constant 0 : index
    %c0_10 = arith.constant 0 : index
    %9 = vector.load %arg2[%c1_8, %c0_9, %c0_10] : memref<9x28x4xf32, #tpu.memory_space<vmem>>, vector<1x28x4xf32>
    %10 = vector.shape_cast %9 : vector<1x28x4xf32> to vector<28x4xf32>
    %cst_11 = arith.constant dense<0.000000e+00> : vector<28x384xf32>
    %11 = tpu.matmul %10, %8, %cst_11 {dimension_numbers = #tpu.dot_dimension_numbers<[1], [0], [0], [1], [0, 0, 1, 1], [], []>} : vector<28x4xf32>, vector<4x384xf32>, vector<28x384xf32> -> vector<28x384xf32>
    %12 = arith.addf %6, %11 : vector<28x384xf32>
    %c0_12 = arith.constant 0 : index
    %c0_13 = arith.constant 0 : index
    %c2 = arith.constant 2 : index
    %13 = vector.load %arg1[%c0_12, %c0_13, %c2] : memref<1x4x512xf32, #tpu.memory_space<vmem>>, vector<1x4x384xf32>
    %14 = vector.shape_cast %13 : vector<1x4x384xf32> to vector<4x384xf32>
    %c2_14 = arith.constant 2 : index
    %c0_15 = arith.constant 0 : index
    %c0_16 = arith.constant 0 : index
    %15 = vector.load %arg2[%c2_14, %c0_15, %c0_16] : memref<9x28x4xf32, #tpu.memory_space<vmem>>, vector<1x28x4xf32>
    %16 = vector.shape_cast %15 : vector<1x28x4xf32> to vector<28x4xf32>
    %cst_17 = arith.constant dense<0.000000e+00> : vector<28x384xf32>
    %17 = tpu.matmul %16, %14, %cst_17 {dimension_numbers = #tpu.dot_dimension_numbers<[1], [0], [0], [1], [0, 0, 1, 1], [], []>} : vector<28x4xf32>, vector<4x384xf32>, vector<28x384xf32> -> vector<28x384xf32>
    %18 = arith.addf %12, %17 : vector<28x384xf32>
    %c0_18 = arith.constant 0 : index
    %c0_19 = arith.constant 0 : index
    %c18 = arith.constant 18 : index
    %19 = vector.load %arg1[%c0_18, %c0_19, %c18] : memref<1x4x512xf32, #tpu.memory_space<vmem>>, vector<1x4x384xf32>
    %20 = vector.shape_cast %19 : vector<1x4x384xf32> to vector<4x384xf32>
    %c3 = arith.constant 3 : index
    %c0_20 = arith.constant 0 : index
    %c0_21 = arith.constant 0 : index
    %21 = vector.load %arg2[%c3, %c0_20, %c0_21] : memref<9x28x4xf32, #tpu.memory_space<vmem>>, vector<1x28x4xf32>
    %22 = vector.shape_cast %21 : vector<1x28x4xf32> to vector<28x4xf32>
    %cst_22 = arith.constant dense<0.000000e+00> : vector<28x384xf32>
    %23 = tpu.matmul %22, %20, %cst_22 {dimension_numbers = #tpu.dot_dimension_numbers<[1], [0], [0], [1], [0, 0, 1, 1], [], []>} : vector<28x4xf32>, vector<4x384xf32>, vector<28x384xf32> -> vector<28x384xf32>
    %24 = arith.addf %18, %23 : vector<28x384xf32>
    %c0_23 = arith.constant 0 : index
    %c0_24 = arith.constant 0 : index
    %c19 = arith.constant 19 : index
    %25 = vector.load %arg1[%c0_23, %c0_24, %c19] : memref<1x4x512xf32, #tpu.memory_space<vmem>>, vector<1x4x384xf32>
    %26 = vector.shape_cast %25 : vector<1x4x384xf32> to vector<4x384xf32>
    %c4 = arith.constant 4 : index
    %c0_25 = arith.constant 0 : index
    %c0_26 = arith.constant 0 : index
    %27 = vector.load %arg2[%c4, %c0_25, %c0_26] : memref<9x28x4xf32, #tpu.memory_space<vmem>>, vector<1x28x4xf32>
    %28 = vector.shape_cast %27 : vector<1x28x4xf32> to vector<28x4xf32>
    %cst_27 = arith.constant dense<0.000000e+00> : vector<28x384xf32>
    %29 = tpu.matmul %28, %26, %cst_27 {dimension_numbers = #tpu.dot_dimension_numbers<[1], [0], [0], [1], [0, 0, 1, 1], [], []>} : vector<28x4xf32>, vector<4x384xf32>, vector<28x384xf32> -> vector<28x384xf32>
    %30 = arith.addf %24, %29 : vector<28x384xf32>
    %c0_28 = arith.constant 0 : index
    %c0_29 = arith.constant 0 : index
    %c20 = arith.constant 20 : index
    %31 = vector.load %arg1[%c0_28, %c0_29, %c20] : memref<1x4x512xf32, #tpu.memory_space<vmem>>, vector<1x4x384xf32>
    %32 = vector.shape_cast %31 : vector<1x4x384xf32> to vector<4x384xf32>
    %c5 = arith.constant 5 : index
    %c0_30 = arith.constant 0 : index
    %c0_31 = arith.constant 0 : index
    %33 = vector.load %arg2[%c5, %c0_30, %c0_31] : memref<9x28x4xf32, #tpu.memory_space<vmem>>, vector<1x28x4xf32>
    %34 = vector.shape_cast %33 : vector<1x28x4xf32> to vector<28x4xf32>
    %cst_32 = arith.constant dense<0.000000e+00> : vector<28x384xf32>
    %35 = tpu.matmul %34, %32, %cst_32 {dimension_numbers = #tpu.dot_dimension_numbers<[1], [0], [0], [1], [0, 0, 1, 1], [], []>} : vector<28x4xf32>, vector<4x384xf32>, vector<28x384xf32> -> vector<28x384xf32>
    %36 = arith.addf %30, %35 : vector<28x384xf32>
    %c0_33 = arith.constant 0 : index
    %c0_34 = arith.constant 0 : index
    %c36 = arith.constant 36 : index
    %37 = vector.load %arg1[%c0_33, %c0_34, %c36] : memref<1x4x512xf32, #tpu.memory_space<vmem>>, vector<1x4x384xf32>
    %38 = vector.shape_cast %37 : vector<1x4x384xf32> to vector<4x384xf32>
    %c6 = arith.constant 6 : index
    %c0_35 = arith.constant 0 : index
    %c0_36 = arith.constant 0 : index
    %39 = vector.load %arg2[%c6, %c0_35, %c0_36] : memref<9x28x4xf32, #tpu.memory_space<vmem>>, vector<1x28x4xf32>
    %40 = vector.shape_cast %39 : vector<1x28x4xf32> to vector<28x4xf32>
    %cst_37 = arith.constant dense<0.000000e+00> : vector<28x384xf32>
    %41 = tpu.matmul %40, %38, %cst_37 {dimension_numbers = #tpu.dot_dimension_numbers<[1], [0], [0], [1], [0, 0, 1, 1], [], []>} : vector<28x4xf32>, vector<4x384xf32>, vector<28x384xf32> -> vector<28x384xf32>
    %42 = arith.addf %36, %41 : vector<28x384xf32>
    %c0_38 = arith.constant 0 : index
    %c0_39 = arith.constant 0 : index
    %c37 = arith.constant 37 : index
    %43 = vector.load %arg1[%c0_38, %c0_39, %c37] : memref<1x4x512xf32, #tpu.memory_space<vmem>>, vector<1x4x384xf32>
    %44 = vector.shape_cast %43 : vector<1x4x384xf32> to vector<4x384xf32>
    %c7 = arith.constant 7 : index
    %c0_40 = arith.constant 0 : index
    %c0_41 = arith.constant 0 : index
    %45 = vector.load %arg2[%c7, %c0_40, %c0_41] : memref<9x28x4xf32, #tpu.memory_space<vmem>>, vector<1x28x4xf32>
    %46 = vector.shape_cast %45 : vector<1x28x4xf32> to vector<28x4xf32>
    %cst_42 = arith.constant dense<0.000000e+00> : vector<28x384xf32>
    %47 = tpu.matmul %46, %44, %cst_42 {dimension_numbers = #tpu.dot_dimension_numbers<[1], [0], [0], [1], [0, 0, 1, 1], [], []>} : vector<28x4xf32>, vector<4x384xf32>, vector<28x384xf32> -> vector<28x384xf32>
    %48 = arith.addf %42, %47 : vector<28x384xf32>
    %c0_43 = arith.constant 0 : index
    %c0_44 = arith.constant 0 : index
    %c38 = arith.constant 38 : index
    %49 = vector.load %arg1[%c0_43, %c0_44, %c38] : memref<1x4x512xf32, #tpu.memory_space<vmem>>, vector<1x4x384xf32>
    %50 = vector.shape_cast %49 : vector<1x4x384xf32> to vector<4x384xf32>
    %c8 = arith.constant 8 : index
    %c0_45 = arith.constant 0 : index
    %c0_46 = arith.constant 0 : index
    %51 = vector.load %arg2[%c8, %c0_45, %c0_46] : memref<9x28x4xf32, #tpu.memory_space<vmem>>, vector<1x28x4xf32>
    %52 = vector.shape_cast %51 : vector<1x28x4xf32> to vector<28x4xf32>
    %cst_47 = arith.constant dense<0.000000e+00> : vector<28x384xf32>
    %53 = tpu.matmul %52, %50, %cst_47 {dimension_numbers = #tpu.dot_dimension_numbers<[1], [0], [0], [1], [0, 0, 1, 1], [], []>} : vector<28x4xf32>, vector<4x384xf32>, vector<28x384xf32> -> vector<28x384xf32>
    %54 = arith.addf %48, %53 : vector<28x384xf32>
    %c0_48 = arith.constant 0 : index
    %c0_49 = arith.constant 0 : index
    %c0_50 = arith.constant 0 : index
    %55 = vector.load %arg3[%c0_48, %c0_49, %c0_50] : memref<1x28x384xf32, #tpu.memory_space<vmem>>, vector<1x28x384xf32>
    %56 = vector.shape_cast %55 : vector<1x28x384xf32> to vector<28x384xf32>
    %57 = vector.shape_cast %54 : vector<28x384xf32> to vector<1x28x384xf32>
    tpu.vector_store %arg3[%c0_48, %c0_49, %c0_50], %57 {strides = array<i32>} : memref<1x28x384xf32, #tpu.memory_space<vmem>>, vector<1x28x384xf32>,
    return
  }
  func.func @transform_0(%arg0: i32) -> (i32, i32, i32) {
    %c0_i32 = arith.constant 0 : i32
    %c0_i32_0 = arith.constant 0 : i32
    %c0_i32_1 = arith.constant 0 : i32
    return %arg0, %c0_i32, %c0_i32_0 : i32, i32, i32
  }
  func.func @transform_1(%arg0: i32) -> (i32, i32, i32) {
    %c0_i32 = arith.constant 0 : i32
    %c0_i32_0 = arith.constant 0 : i32
    %c0_i32_1 = arith.constant 0 : i32
    %c0_i32_2 = arith.constant 0 : i32
    return %c0_i32, %c0_i32_0, %c0_i32_1 : i32, i32, i32
  }
  func.func @transform_2(%arg0: i32) -> (i32, i32, i32) {
    %c0_i32 = arith.constant 0 : i32
    %c0_i32_0 = arith.constant 0 : i32
    %c0_i32_1 = arith.constant 0 : i32
    return %arg0, %c0_i32, %c0_i32_0 : i32, i32, i32
  }
}

</mosaic_0001>

<bundles_post_ra>
// kernel: ssd_fused_conv.1
= control target key start
LH: loop header
LB: loop body
LE: loop exit
PB: predicated region body
PF: predicated region fallthrough
CT: control target
= control target key end

     0   :  { %s2531_s9 = smov 0   ;;  %s3065_s0 = inlined_call_operand.vmem [shape: f32[2,4,512], index: 0, kind: input, shape index: {}]   ;;  %s3066_s1 = inlined_call_operand.vmem [shape: f32[9,28,4], index: 1, kind: input, shape index: {}]   ;;  %s3067_s2 = inlined_call_operand.vmem [shape: f32[2,28,384], index: 2, kind: output, shape index: {}]  }
   0x1 LB: > { %s2218_s10 = sadd.s32 4294967295, %s2505_s9   ;;  %p2222_p0 = scmp.ge.s32.totalorder %s2505_s9, 1  ;;  %s2505_s9 = sphi %s2531_s9, %s12_s9  }
   0x2   : > { %p112_p1 = scmp.lt.s32.totalorder %s2505_s9, 3 }
   0x4   : > { %p113_p2 = pnand %p2222_p0, %p112_p1 }
   0x6   : > { %116 = sbr.rel (%p113_p2) target bundleno = 443 (0x1bb), region = 28 }
   0xb   : > { %p134_p3 = scmp.lt.s32.totalorder %s2218_s10, 1  ;;  %v2507_v0 = vmov 0.0   ;;  %s2508_s15 = smov 127   ;;  %vm169_vm0 = vcmask 1039360   ;;  %vm186_vm1 = vcmask 1043456   ;;  %v2226_v10 = vld [vmem:[%s3066_s1 + $0x20] sm:$0xff] }
   0xc   : > { %257 = vmatprep.mubr.f32.mxu0 %v2507_v0  ;;  %275 = vmatprep.mubr.f32.mxu1 %v2507_v0  ;;  %s2509_s16 = smov 126   ;;  %s2510_s17 = smov 110   ;;  %vm173_vm2 = vcmask 31744   ;;  %v2229_v11 = vld [vmem:[%s3066_s1 + $0x38] sm:$0xf]  ;;  %vm581_vm3 = vcmask 1031168  }
   0xd   : > { %s3103_s10 = smov (!%p134_p3, %s2218_s10), 1  ;;  %s2511_s18 = smov 109   ;;  %v2227_v17 = vld [vmem:[%s3066_s1 + $0x28] sm:$0xff]  ;;  %v2228_v19 = vld [vmem:[%s3066_s1 + $0x30] sm:$0xff]  ;;  %v146_v24 = vld [vmem:[%s3066_s1] sm:$0xff]  ;;  %vm808_vm4 = vcmask 900096  }
   0xe   : > { %s2359_s11 = sshll.u32 %s3103_s10, 4  ;;  %s2512_s19 = smov 108   ;;  %v147_v26 = vld [vmem:[%s3066_s1 + $0x8] sm:$0xff]  ;;  %v148_v28 = vld [vmem:[%s3066_s1 + $0x10] sm:$0xff]  ;;  %v149_v32 = vld [vmem:[%s3066_s1 + $0x18] sm:$0xf] }
   0xf   : > { %s2547_s14 = scalar_lea.vmem %s3065_s0, %s2359_s11  ;;  %s2513_s20 = smov 92   ;;  %vm1035_vm5 = vcmask 891904   ;;  %v2252_v35 = vld [vmem:[%s3066_s1 + $0x40] sm:$0xff]  ;;  %v2253_v38 = vld [vmem:[%s3066_s1 + $0x48] sm:$0xff]  ;;  %v2254_v41 = vld [vmem:[%s3066_s1 + $0x50] sm:$0xff]  ;;  %vm1262_vm6 = vcmask 883712  }
  0x10   : > { %v2550_v1 = vld [vmem:[%s2547_s14] sm:$0xff]  ;;  %v151_v2 = vld [vmem:[%s2547_s14 + $0x8] sm:$0xff]  ;;  %s2514_s21 = smov 91   ;;  %s2515_s22 = smov 90   ;;  %v2255_v45 = vld [vmem:[%s3066_s1 + $0x58] sm:$0xf] }
  0x11   : > { %161 = vrot.lane.b32.xlu1 %v2550_v1, %s2508_s15  ;;  %v2556_v3 = vcombine.high %v2550_v1, %v2550_v1  ;;  %v160_v4 = vcombine.high %v151_v2, %v151_v2  ;;  %v145_v13 = vld [vmem:[%s2547_s14 + $0x8] sm:$0xf]  ;;  %v2267_v47 = vld [vmem:[%s3066_s1 + $0x60] sm:$0xff]  ;;  %v2269_v51 = vld [vmem:[%s3066_s1 + $0x70] sm:$0xff]  ;;  %vm1489_vm7 = vcmask 752640   ;;  %vm1716_vm8 = vcmask 744448  }
  0x12   : > { %v2268_v48 = vld [vmem:[%s3066_s1 + $0x68] sm:$0xff]  ;;  %v2270_v55 = vld [vmem:[%s3066_s1 + $0x78] sm:$0xf]  ;;  %v2282_v57 = vld [vmem:[%s3066_s1 + $0x80] sm:$0xff]  ;;  %vm1943_vm9 = vcmask 736256  }
  0x13   : > { %163 = vrot.lane.b32.xlu0 %v2556_v3, %s2508_s15  ;;  %v2283_v60 = vld [vmem:[%s3066_s1 + $0x88] sm:$0xff]  ;;  %v2284_v63 = vld [vmem:[%s3066_s1 + $0x90] sm:$0xff] }
  0x15   : > { %167 = vrot.lane.b32.xlu1 %v160_v4, %s2508_s15 }
  0x17   : > { %165 = vrot.lane.b32.xlu0 %v151_v2, %s2508_s15 }
  0x19   : > { %577 = vrot.lane.b32.xlu1 %v151_v2, %s2509_s16 }
  0x1b   : > { %575 = vrot.lane.b32.xlu0 %v2556_v3, %s2509_s16 }
  0x1d   : > { %579 = vrot.lane.b32.xlu1 %v160_v4, %s2509_s16 }
  0x1f   : > { %573 = vrot.lane.b32.xlu0 %v2550_v1, %s2509_s16 }
  0x21   : > { %804 = vrot.lane.b32.xlu1 %v151_v2, %s2510_s17 }
  0x23   : > { %802 = vrot.lane.b32.xlu0 %v2556_v3, %s2510_s17 }
  0x25   : > { %800 = vrot.lane.b32.xlu1 %v2550_v1, %s2510_s17 }
  0x27   : > { %806 = vrot.lane.b32.xlu0 %v160_v4, %s2510_s17  ;;  %s2479_s17 = smul.u32 96, %s3103_s10 }
  0x29   : > { %1031 = vrot.lane.b32.xlu1 %v151_v2, %s2511_s18 }
  0x2b   : > { %1029 = vrot.lane.b32.xlu0 %v2556_v3, %s2511_s18 }
  0x2d   : > { %1033 = vrot.lane.b32.xlu1 %v160_v4, %s2511_s18 }
  0x2f   : > { %1027 = vrot.lane.b32.xlu0 %v2550_v1, %s2511_s18 }
  0x31   : > { %1258 = vrot.lane.b32.xlu1 %v151_v2, %s2512_s19 }
  0x33   : > { %1256 = vrot.lane.b32.xlu0 %v2556_v3, %s2512_s19 }
  0x35   : > { %1254 = vrot.lane.b32.xlu1 %v2550_v1, %s2512_s19 }
  0x37   : > { %1260 = vrot.lane.b32.xlu0 %v160_v4, %s2512_s19  ;;  %s3020_s19 = scalar_lea.vmem %s3067_s2, %s2479_s17 }
  0x39   : > { %1485 = vrot.lane.b32.xlu1 %v151_v2, %s2513_s20 }
  0x3b   : > { %1483 = vrot.lane.b32.xlu0 %v2556_v3, %s2513_s20 }
  0x3d   : > { %1487 = vrot.lane.b32.xlu1 %v160_v4, %s2513_s20 }
  0x3f   : > { %1481 = vrot.lane.b32.xlu0 %v2550_v1, %s2513_s20 }
  0x41   : > { %1712 = vrot.lane.b32.xlu1 %v151_v2, %s2514_s21 }
  0x43   : > { %1710 = vrot.lane.b32.xlu0 %v2556_v3, %s2514_s21 }
  0x45   : > { %1708 = vrot.lane.b32.xlu1 %v2550_v1, %s2514_s21 }
  0x47   : > { %1714 = vrot.lane.b32.xlu0 %v160_v4, %s2514_s21 }
  0x49   : > { %1939 = vrot.lane.b32.xlu1 %v151_v2, %s2515_s22 }
  0x4b   : > { %1937 = vrot.lane.b32.xlu0 %v2556_v3, %s2515_s22 }
  0x4d   : > { %1941 = vrot.lane.b32.xlu1 %v160_v4, %s2515_s22  ;;  %v2285_v4 = vld [vmem:[%s3066_s1 + $0x98] sm:$0xf] }
  0x4f   : > { %1935 = vrot.lane.b32.xlu0 %v2550_v1, %s2515_s22 }
  0x83   : > { %v162_v5 = vpop.permute.xlu1 %161 }
  0x85   : > { %v164_v6 = vpop.permute.xlu0 %163 }
  0x86   : > { %v170_v12 = vsel %vm169_vm0, %v162_v5, %v164_v6 }
  0x87   : > { %v168_v7 = vpop.permute.xlu1 %167 }
  0x89   : > { %v166_v8 = vpop.permute.xlu0 %165 }
  0x8a   : > { %v171_v9 = vsel %vm169_vm0, %v164_v6, %v166_v8  ;;  %v172_v15 = vsel %vm169_vm0, %v166_v8, %v168_v7  ;;  %v2297_v6 = vld [vmem:[%s3066_s1 + $0xa0] sm:$0xff]  ;;  %v2298_v7 = vld [vmem:[%s3066_s1 + $0xa8] sm:$0xff] }
  0x8b   : > { %2230 = vmatprep.subr.msk.mxu0 %vm186_vm1, %v171_v9  ;;  %2477 = vmatprep.subr.msk.mxu1 %vm186_vm1, %v171_v9  ;;  %v578_v14 = vpop.permute.xlu1 %577 }
  0x8c   : > { %2231 = vmatpush1.msk.msra.mxu0 %vm186_vm1, %v170_v12  ;;  %2478 = vmatpush1.msk.msra.mxu1 %vm186_vm1, %v170_v12 }
  0x8d   : > { %2232 = vmatmul.mubr.msk.f32.vlgmr.msra.gmra.mxu0 %vm173_vm2, %v2226_v10  ;;  %2235 = vmatmul.mubr.msk.f32.vlgmr.msra.gmra.mxu1 %vm173_vm2, %v2229_v11  ;;  %v576_v16 = vpop.permute.xlu0 %575 }
  0x8e   : > { %2405 = vmatprep.subr.msk.mxu1 %vm186_vm1, %v172_v15  ;;  %2413 = vmatprep.subr.msk.mxu0 %vm186_vm1, %v145_v13  ;;  %v583_v20 = vsel %vm581_vm3, %v576_v16, %v578_v14 }
  0x8f   : > { %2406 = vmatpush3.msk.msra.mxu1 %vm186_vm1, %v172_v15  ;;  %2414 = vmatpush3.msk.msra.mxu0 %vm186_vm1, %v145_v13  ;;  %v580_v18 = vpop.permute.xlu1 %579 }
  0x90   : > { %263 = vmatprep.mubr.f32.mxu0 %v2507_v0  ;;  %2407 = vmatprep.mubr.msk.f32.mxu1 %vm173_vm2, %v2226_v10  ;;  %v584_v21 = vsel %vm581_vm3, %v578_v14, %v580_v18  ;;  %v2299_v10 = vld [vmem:[%s3066_s1 + $0xb0] sm:$0xff]  ;;  %v2300_v14 = vld [vmem:[%s3066_s1 + $0xb8] sm:$0xf] }
  0x91   : > { %2233 = vmatmul.mubr.msk.f32.gmra.mxu0 %vm173_vm2, %v2227_v17  ;;  %2408 = vmatmul.mubr.msk.f32.vlgmr.msra.gmra.mxu1 %vm173_vm2, %v2227_v17  ;;  %v574_v22 = vpop.permute.xlu0 %573 }
  0x92   : > { %2241 = vmatprep.subr.msk.mxu1 %vm186_vm1, %v2556_v3  ;;  %269 = vmatprep.mubr.f32.mxu0 %v2507_v0  ;;  %v582_v27 = vsel %vm581_vm3, %v574_v22, %v576_v16  ;;  %v2312_v16 = vld [vmem:[%s3066_s1 + $0xc0] sm:$0xff] }
  0x93   : > { %2242 = vmatpush1.msk.msra.mxu1 %vm186_vm1, %v2550_v1  ;;  %2410 = vmatprep.mubr.msk.f32.mxu1 %vm173_vm2, %v2228_v19  ;;  %v805_v23 = vpop.permute.xlu1 %804 }
  0x94   : > { %2256 = vmatprep.subr.msk.mxu0 %vm186_vm1, %v583_v20  ;;  %2421 = vmatprep.subr.msk.mxu1 %vm186_vm1, %v584_v21 }
  0x95   : > { %2234 = vmatmul.mubr.msk.f32.gmra.mxu0 %vm173_vm2, %v2228_v19  ;;  %2411 = vmatmul.mubr.msk.f32.gmra.mxu1 %vm173_vm2, %v2229_v11  ;;  %v803_v25 = vpop.permute.xlu0 %802  ;;  %v2313_v19 = vld [vmem:[%s3066_s1 + $0xc8] sm:$0xff] }
  0x96   : > { %452 = vmatprep.mubr.f32.mxu1 %v2507_v0  ;;  %2415 = vmatprep.mubr.msk.f32.mxu0 %vm173_vm2, %v146_v24  ;;  %v810_v29 = vsel %vm808_vm4, %v803_v25, %v805_v23 }
  0x97   : > { %v801_v30 = vpop.permute.xlu1 %800 }
  0x98   : > { %v809_v42 = vsel %vm808_vm4, %v801_v30, %v803_v25  ;;  %v2327_v25 = vld [vmem:[%s3066_s1 + $0xe0] sm:$0xff]  ;;  %v2330_v30 = vld [vmem:[%s3066_s1 + $0xf8] sm:$0xf] }
  0x99   : > { %2243 = vmatmul.mubr.msk.f32.vlgmr.msra.gmra.mxu1 %vm173_vm2, %v146_v24  ;;  %2416 = vmatmul.mubr.msk.f32.vlgmr.msra.gmra.mxu0 %vm173_vm2, %v147_v26  ;;  %v807_v31 = vpop.permute.xlu0 %806  ;;  %v2315_v24 = vld [vmem:[%s3066_s1 + $0xd8] sm:$0xf] }
  0x9a   : > { %2257 = vmatpush1.msk.msra.mxu0 %vm186_vm1, %v582_v27  ;;  %2422 = vmatpush3.msk.msra.mxu1 %vm186_vm1, %v584_v21  ;;  %v811_v33 = vsel %vm808_vm4, %v805_v23, %v807_v31  ;;  %v2314_v21 = vld [vmem:[%s3066_s1 + $0xd0] sm:$0xff]  ;;  %v2328_v27 = vld [vmem:[%s3066_s1 + $0xe8] sm:$0xff]  ;;  %v2342_v31 = vld [vmem:[%s3066_s1 + $0x100] sm:$0xff] }
  0x9b   : > { %458 = vmatprep.mubr.f32.mxu1 %v2507_v0  ;;  %2418 = vmatprep.mubr.msk.f32.mxu0 %vm173_vm2, %v148_v28  ;;  %v1032_v34 = vpop.permute.xlu1 %1031 }
  0x9c   : > { %2271 = vmatprep.subr.msk.mxu1 %vm186_vm1, %v810_v29  ;;  %2429 = vmatprep.subr.msk.mxu0 %vm186_vm1, %v811_v33  ;;  %v2329_v29 = vld [vmem:[%s3066_s1 + $0xf0] sm:$0xff] }
  0x9d   : > { %2244 = vmatmul.mubr.msk.f32.gmra.mxu1 %vm173_vm2, %v147_v26  ;;  %2419 = vmatmul.mubr.msk.f32.gmra.mxu0 %vm173_vm2, %v149_v32  ;;  %v1030_v36 = vpop.permute.xlu0 %1029 }
  0x9e   : > { %464 = vmatprep.mubr.f32.mxu1 %v2507_v0  ;;  %667 = vmatprep.mubr.f32.mxu0 %v2507_v0  ;;  %v1037_v37 = vsel %vm1035_vm5, %v1030_v36, %v1032_v34 }
  0x9f   : > { %v1034_v40 = vpop.permute.xlu1 %1033 }
  0xa0   : > { %v1038_v43 = vsel %vm1035_vm5, %v1032_v34, %v1034_v40  ;;  %v2345_v34 = vld [vmem:[%s3066_s1 + $0x118] sm:$0xf] }
  0xa1   : > { %2245 = vmatmul.mubr.msk.f32.gmra.mxu1 %vm173_vm2, %v148_v28  ;;  %2258 = vmatmul.mubr.msk.f32.vlgmr.msra.gmra.mxu0 %vm173_vm2, %v2252_v35  ;;  %v1028_v39 = vpop.permute.xlu0 %1027 }
  0xa2   : > { %2430 = vmatpush3.msk.msra.mxu0 %vm186_vm1, %v811_v33  ;;  %470 = vmatprep.mubr.f32.mxu1 %v2507_v0  ;;  %v1036_v50 = vsel %vm1035_vm5, %v1028_v39, %v1030_v36  ;;  %v2344_v33 = vld [vmem:[%s3066_s1 + $0x110] sm:$0xff] }
  0xa3   : > { %673 = vmatprep.mubr.f32.mxu0 %v2507_v0  ;;  %2286 = vmatprep.subr.msk.mxu0 %vm186_vm1, %v1037_v37  ;;  %v1259_v46 = vpop.permute.xlu1 %1258 }
  0xa5   : > { %2246 = vmatmul.mubr.msk.f32.gmra.mxu1 %vm173_vm2, %v149_v32  ;;  %2259 = vmatmul.mubr.msk.f32.gmra.mxu0 %vm173_vm2, %v2253_v38  ;;  %v1257_v44 = vpop.permute.xlu0 %1256  ;;  %v2343_v32 = vld [vmem:[%s3066_s1 + $0x108] sm:$0xff] }
  0xa6   : > { %679 = vmatprep.mubr.f32.mxu0 %v2507_v0  ;;  %2423 = vmatprep.mubr.msk.f32.mxu1 %vm173_vm2, %v2252_v35  ;;  %v1264_v52 = vsel %vm1262_vm6, %v1257_v44, %v1259_v46 }
  0xa7   : > { %v1255_v53 = vpop.permute.xlu1 %1254 }
  0xa8   : > { %v1263_v1 = vsel %vm1262_vm6, %v1255_v53, %v1257_v44 }
  0xa9   : > { %2260 = vmatmul.mubr.msk.f32.gmra.mxu0 %vm173_vm2, %v2254_v41  ;;  %2424 = vmatmul.mubr.msk.f32.vlgmr.msra.gmra.mxu1 %vm173_vm2, %v2253_v38  ;;  %v1261_v49 = vpop.permute.xlu0 %1260 }
  0xaa   : > { %2272 = vmatpush1.msk.msra.mxu1 %vm186_vm1, %v809_v42  ;;  %685 = vmatprep.mubr.f32.mxu0 %v2507_v0  ;;  %v1265_v54 = vsel %vm1262_vm6, %v1259_v46, %v1261_v49 }
  0xab   : > { %2426 = vmatprep.mubr.msk.f32.mxu1 %vm173_vm2, %v2254_v41  ;;  %2437 = vmatprep.subr.msk.mxu1 %vm186_vm1, %v1038_v43  ;;  %v1486_v56 = vpop.permute.xlu1 %1485 }
  0xad   : > { %2261 = vmatmul.mubr.msk.f32.gmra.mxu0 %vm173_vm2, %v2255_v45  ;;  %2427 = vmatmul.mubr.msk.f32.gmra.mxu1 %vm173_vm2, %v2255_v45  ;;  %v1484_v58 = vpop.permute.xlu0 %1483 }
  0xae   : > { %894 = vmatprep.mubr.f32.mxu1 %v2507_v0  ;;  %2431 = vmatprep.mubr.msk.f32.mxu0 %vm173_vm2, %v2267_v47  ;;  %v1491_v59 = vsel %vm1489_vm7, %v1484_v58, %v1486_v56 }
  0xaf   : > { %v1488_v62 = vpop.permute.xlu1 %1487 }
  0xb0   : > { %v1492_v2 = vsel %vm1489_vm7, %v1486_v56, %v1488_v62 }
  0xb1   : > { %2273 = vmatmul.mubr.msk.f32.vlgmr.msra.gmra.mxu1 %vm173_vm2, %v2267_v47  ;;  %2432 = vmatmul.mubr.msk.f32.vlgmr.msra.gmra.mxu0 %vm173_vm2, %v2268_v48  ;;  %v1482_v61 = vpop.permute.xlu0 %1481 }
  0xb2   : > { %2287 = vmatpush1.msk.msra.mxu0 %vm186_vm1, %v1036_v50  ;;  %2438 = vmatpush3.msk.msra.mxu1 %vm186_vm1, %v1038_v43  ;;  %v1490_v9 = vsel %vm1489_vm7, %v1482_v61, %v1484_v58 }
  0xb3   : > { %900 = vmatprep.mubr.f32.mxu1 %v2507_v0  ;;  %2434 = vmatprep.mubr.msk.f32.mxu0 %vm173_vm2, %v2269_v51  ;;  %v1713_v5 = vpop.permute.xlu1 %1712 }
  0xb4   : > { %2301 = vmatprep.subr.msk.mxu1 %vm186_vm1, %v1264_v52  ;;  %2445 = vmatprep.subr.msk.mxu0 %vm186_vm1, %v1265_v54 }
  0xb5   : > { %2274 = vmatmul.mubr.msk.f32.gmra.mxu1 %vm173_vm2, %v2268_v48  ;;  %2435 = vmatmul.mubr.msk.f32.gmra.mxu0 %vm173_vm2, %v2270_v55  ;;  %v1711_v3 = vpop.permute.xlu0 %1710 }
  0xb6   : > { %906 = vmatprep.mubr.f32.mxu1 %v2507_v0  ;;  %1121 = vmatprep.mubr.f32.mxu0 %v2507_v0  ;;  %v1718_v11 = vsel %vm1716_vm8, %v1711_v3, %v1713_v5 }
  0xb7   : > { %v1709_v12 = vpop.permute.xlu1 %1708 }
  0xb8   : > { %v1717_v22 = vsel %vm1716_vm8, %v1709_v12, %v1711_v3 }
  0xb9   : > { %2275 = vmatmul.mubr.msk.f32.gmra.mxu1 %vm173_vm2, %v2269_v51  ;;  %2288 = vmatmul.mubr.msk.f32.vlgmr.msra.gmra.mxu0 %vm173_vm2, %v2282_v57  ;;  %v1715_v8 = vpop.permute.xlu0 %1714 }
  0xba   : > { %2446 = vmatpush3.msk.msra.mxu0 %vm186_vm1, %v1265_v54  ;;  %912 = vmatprep.mubr.f32.mxu1 %v2507_v0  ;;  %v1719_v13 = vsel %vm1716_vm8, %v1713_v5, %v1715_v8 }
  0xbb   : > { %1127 = vmatprep.mubr.f32.mxu0 %v2507_v0  ;;  %2316 = vmatprep.subr.msk.mxu0 %vm186_vm1, %v1491_v59  ;;  %v1940_v15 = vpop.permute.xlu1 %1939 }
  0xbd   : > { %2276 = vmatmul.mubr.msk.f32.gmra.mxu1 %vm173_vm2, %v2270_v55  ;;  %2289 = vmatmul.mubr.msk.f32.gmra.mxu0 %vm173_vm2, %v2283_v60  ;;  %v1938_v17 = vpop.permute.xlu0 %1937 }
  0xbe   : > { %1133 = vmatprep.mubr.f32.mxu0 %v2507_v0  ;;  %2439 = vmatprep.mubr.msk.f32.mxu1 %vm173_vm2, %v2282_v57  ;;  %v1945_v18 = vsel %vm1943_vm9, %v1938_v17, %v1940_v15 }
  0xbf   : > { %v1942_v20 = vpop.permute.xlu1 %1941 }
  0xc0   : > { %v1946_v23 = vsel %vm1943_vm9, %v1940_v15, %v1942_v20 }
  0xc1   : > { %2290 = vmatmul.mubr.msk.f32.gmra.mxu0 %vm173_vm2, %v2284_v63  ;;  %2440 = vmatmul.mubr.msk.f32.vlgmr.msra.gmra.mxu1 %vm173_vm2, %v2283_v60  ;;  %v1936_v26 = vpop.permute.xlu0 %1935 }
  0xc2   : > { %2302 = vmatpush1.msk.msra.mxu1 %vm186_vm1, %v1263_v1  ;;  %1139 = vmatprep.mubr.f32.mxu0 %v2507_v0  ;;  %v1944_v28 = vsel %vm1943_vm9, %v1936_v26, %v1938_v17 }
  0xc3   : > { %2442 = vmatprep.mubr.msk.f32.mxu1 %vm173_vm2, %v2284_v63  ;;  %2453 = vmatprep.subr.msk.mxu1 %vm186_vm1, %v1492_v2 }
  0xc5   : > { %2291 = vmatmul.mubr.msk.f32.gmra.mxu0 %vm173_vm2, %v2285_v4  ;;  %2443 = vmatmul.mubr.msk.f32.gmra.mxu1 %vm173_vm2, %v2285_v4 }
  0xc6   : > { %1348 = vmatprep.mubr.f32.mxu1 %v2507_v0  ;;  %2447 = vmatprep.mubr.msk.f32.mxu0 %vm173_vm2, %v2297_v6 }
  0xc9   : > { %2303 = vmatmul.mubr.msk.f32.vlgmr.msra.gmra.mxu1 %vm173_vm2, %v2297_v6  ;;  %2448 = vmatmul.mubr.msk.f32.vlgmr.msra.gmra.mxu0 %vm173_vm2, %v2298_v7 }
  0xca   : > { %2317 = vmatpush1.msk.msra.mxu0 %vm186_vm1, %v1490_v9  ;;  %2454 = vmatpush3.msk.msra.mxu1 %vm186_vm1, %v1492_v2 }
  0xcb   : > { %1354 = vmatprep.mubr.f32.mxu1 %v2507_v0  ;;  %2450 = vmatprep.mubr.msk.f32.mxu0 %vm173_vm2, %v2299_v10 }
  0xcc   : > { %2331 = vmatprep.subr.msk.mxu1 %vm186_vm1, %v1718_v11  ;;  %2461 = vmatprep.subr.msk.mxu0 %vm186_vm1, %v1719_v13 }
  0xcd   : > { %2304 = vmatmul.mubr.msk.f32.gmra.mxu1 %vm173_vm2, %v2298_v7  ;;  %2451 = vmatmul.mubr.msk.f32.gmra.mxu0 %vm173_vm2, %v2300_v14 }
  0xce   : > { %1360 = vmatprep.mubr.f32.mxu1 %v2507_v0  ;;  %1575 = vmatprep.mubr.f32.mxu0 %v2507_v0 }
  0xd1   : > { %2305 = vmatmul.mubr.msk.f32.gmra.mxu1 %vm173_vm2, %v2299_v10  ;;  %2318 = vmatmul.mubr.msk.f32.vlgmr.msra.gmra.mxu0 %vm173_vm2, %v2312_v16 }
  0xd2   : > { %2462 = vmatpush3.msk.msra.mxu0 %vm186_vm1, %v1719_v13  ;;  %1366 = vmatprep.mubr.f32.mxu1 %v2507_v0 }
  0xd3   : > { %1581 = vmatprep.mubr.f32.mxu0 %v2507_v0  ;;  %2346 = vmatprep.subr.msk.mxu0 %vm186_vm1, %v1945_v18 }
  0xd5   : > { %2306 = vmatmul.mubr.msk.f32.gmra.mxu1 %vm173_vm2, %v2300_v14  ;;  %2319 = vmatmul.mubr.msk.f32.gmra.mxu0 %vm173_vm2, %v2313_v19 }
  0xd6   : > { %1587 = vmatprep.mubr.f32.mxu0 %v2507_v0  ;;  %2455 = vmatprep.mubr.msk.f32.mxu1 %vm173_vm2, %v2312_v16 }
  0xd9   : > { %2320 = vmatmul.mubr.msk.f32.gmra.mxu0 %vm173_vm2, %v2314_v21  ;;  %2456 = vmatmul.mubr.msk.f32.vlgmr.msra.gmra.mxu1 %vm173_vm2, %v2313_v19 }
  0xda   : > { %2332 = vmatpush1.msk.msra.mxu1 %vm186_vm1, %v1717_v22  ;;  %1593 = vmatprep.mubr.f32.mxu0 %v2507_v0 }
  0xdb   : > { %2458 = vmatprep.mubr.msk.f32.mxu1 %vm173_vm2, %v2314_v21  ;;  %2469 = vmatprep.subr.msk.mxu1 %vm186_vm1, %v1946_v23 }
  0xdd   : > { %2321 = vmatmul.mubr.msk.f32.gmra.mxu0 %vm173_vm2, %v2315_v24  ;;  %2459 = vmatmul.mubr.msk.f32.gmra.mxu1 %vm173_vm2, %v2315_v24 }
  0xde   : > { %1802 = vmatprep.mubr.f32.mxu1 %v2507_v0  ;;  %2463 = vmatprep.mubr.msk.f32.mxu0 %vm173_vm2, %v2327_v25 }
  0xe1   : > { %2333 = vmatmul.mubr.msk.f32.vlgmr.msra.gmra.mxu1 %vm173_vm2, %v2327_v25  ;;  %2464 = vmatmul.mubr.msk.f32.vlgmr.msra.gmra.mxu0 %vm173_vm2, %v2328_v27 }
  0xe2   : > { %2347 = vmatpush1.msk.msra.mxu0 %vm186_vm1, %v1944_v28  ;;  %2470 = vmatpush3.msk.msra.mxu1 %vm186_vm1, %v1946_v23 }
  0xe3   : > { %1808 = vmatprep.mubr.f32.mxu1 %v2507_v0  ;;  %2466 = vmatprep.mubr.msk.f32.mxu0 %vm173_vm2, %v2329_v29 }
  0xe5   : > { %2334 = vmatmul.mubr.msk.f32.gmra.mxu1 %vm173_vm2, %v2328_v27  ;;  %2467 = vmatmul.mubr.msk.f32.gmra.mxu0 %vm173_vm2, %v2330_v30 }
  0xe6   : > { %1814 = vmatprep.mubr.f32.mxu1 %v2507_v0  ;;  %2029 = vmatprep.mubr.f32.mxu0 %v2507_v0 }
  0xe9   : > { %2335 = vmatmul.mubr.msk.f32.gmra.mxu1 %vm173_vm2, %v2329_v29  ;;  %2348 = vmatmul.mubr.msk.f32.vlgmr.msra.gmra.mxu0 %vm173_vm2, %v2342_v31 }
  0xea   : > { %1820 = vmatprep.mubr.f32.mxu1 %v2507_v0  ;;  %2035 = vmatprep.mubr.f32.mxu0 %v2507_v0 }
  0xed   : > { %2336 = vmatmul.mubr.msk.f32.gmra.mxu1 %vm173_vm2, %v2330_v30  ;;  %2349 = vmatmul.mubr.msk.f32.gmra.mxu0 %vm173_vm2, %v2343_v32 }
  0xee   : > { %2041 = vmatprep.mubr.f32.mxu0 %v2507_v0  ;;  %2471 = vmatprep.mubr.msk.f32.mxu1 %vm173_vm2, %v2342_v31 }
  0xf1   : > { %2350 = vmatmul.mubr.msk.f32.gmra.mxu0 %vm173_vm2, %v2344_v33  ;;  %2472 = vmatmul.mubr.msk.f32.vlgmr.msra.gmra.mxu1 %vm173_vm2, %v2343_v32 }
  0xf2   : > { %2047 = vmatprep.mubr.f32.mxu0 %v2507_v0  ;;  %2474 = vmatprep.mubr.msk.f32.mxu1 %vm173_vm2, %v2344_v33 }
  0xf5   : > { %2351 = vmatmul.mubr.msk.f32.gmra.mxu0 %vm173_vm2, %v2345_v34  ;;  %2475 = vmatmul.mubr.msk.f32.gmra.mxu1 %vm173_vm2, %v2345_v34 }
 0x14d   : > { %v259_v35 = vpop.f32.mrf.mxu0  ;;  %v277_v36 = vpop.f32.mrf.mxu1 }
 0x14f   : > { %v261_v37 = vpop.f32.mrf.mxu0  ;;  %v279_v38 = vpop.f32.mrf.mxu1 }
 0x151   : > { %v265_v39 = vpop.f32.mrf.mxu0  ;;  %v2409_v40 = vpop.f32.mrf.mxu1 }
 0x153   : > { %v267_v41 = vpop.f32.mrf.mxu0  ;;  %v348_v42 = vpop.f32.mrf.mxu1 }
 0x155   : > { %v271_v43 = vpop.f32.mrf.mxu0  ;;  %v2412_v0 = vpop.f32.mrf.mxu1 }
 0x157   : > { %v273_v44 = vpop.f32.mrf.mxu0  ;;  %v358_v45 = vpop.f32.mrf.mxu1 }
 0x159   : > { %v454_v46 = vpop.f32.mrf.mxu1  ;;  %v2417_v47 = vpop.f32.mrf.mxu0 }
 0x15a   : > { %v2849_v48 = vadd.f32 %v454_v46, %v259_v35  ;;  %v2851_v49 = vadd.f32 %v2417_v47, %v2409_v40 }
 0x15b   : > { %v456_v50 = vpop.f32.mrf.mxu1  ;;  %v543_v51 = vpop.f32.mrf.mxu0 }
 0x15c   : > { %v2853_v52 = vadd.f32 %v456_v50, %v261_v37  ;;  %v2855_v53 = vadd.f32 %v543_v51, %v348_v42 }
 0x15d   : > { %v460_v54 = vpop.f32.mrf.mxu1  ;;  %v2420_v55 = vpop.f32.mrf.mxu0 }
 0x15e   : > { %v2857_v56 = vadd.f32 %v460_v54, %v265_v39  ;;  %v2859_v57 = vadd.f32 %v2420_v55, %v2412_v0 }
 0x15f   : > { %v462_v58 = vpop.f32.mrf.mxu1  ;;  %v553_v59 = vpop.f32.mrf.mxu0 }
 0x160   : > { %v2861_v60 = vadd.f32 %v462_v58, %v267_v41  ;;  %v2863_v61 = vadd.f32 %v553_v59, %v358_v45 }
 0x161   : > { %v466_v62 = vpop.f32.mrf.mxu1  ;;  %v2865_v63 = vpop.f32.mrf.mxu0 }
 0x162   : > { %v2867_v1 = vadd.f32 %v466_v62, %v271_v43 }
 0x163   : > { %v468_v2 = vpop.f32.mrf.mxu1  ;;  %v2869_v3 = vpop.f32.mrf.mxu0 }
 0x164   : > { %v2871_v4 = vadd.f32 %v468_v2, %v273_v44 }
 0x165   : > { %v472_v5 = vpop.f32.mrf.mxu1  ;;  %v2873_v6 = vpop.f32.mrf.mxu0 }
 0x166   : > { %v2875_v7 = vadd.f32 %v472_v5, %v277_v36 }
 0x167   : > { %v474_v8 = vpop.f32.mrf.mxu1  ;;  %v2877_v9 = vpop.f32.mrf.mxu0 }
 0x168   : > { %v2879_v10 = vadd.f32 %v474_v8, %v279_v38 }
 0x169   : > { %v2881_v11 = vpop.f32.mrf.mxu0  ;;  %v2883_v12 = vpop.f32.mrf.mxu1 }
 0x16b   : > { %v2885_v13 = vpop.f32.mrf.mxu0  ;;  %v2887_v14 = vpop.f32.mrf.mxu1 }
 0x16d   : > { %v2889_v15 = vpop.f32.mrf.mxu0  ;;  %v2891_v16 = vpop.f32.mrf.mxu1 }
 0x16f   : > { %v2893_v17 = vpop.f32.mrf.mxu0  ;;  %v2895_v18 = vpop.f32.mrf.mxu1 }
 0x171   : > { %v896_v19 = vpop.f32.mrf.mxu1  ;;  %v2897_v20 = vpop.f32.mrf.mxu0 }
 0x173   : > { %v898_v21 = vpop.f32.mrf.mxu1  ;;  %v2899_v22 = vpop.f32.mrf.mxu0 }
 0x175   : > { %v902_v23 = vpop.f32.mrf.mxu1  ;;  %v2901_v24 = vpop.f32.mrf.mxu0 }
 0x177   : > { %v2903_v25 = vpop.f32.mrf.mxu1  ;;  %v2905_v26 = vpop.f32.mrf.mxu0 }
 0x179   : > { %v2907_v27 = vpop.f32.mrf.mxu1  ;;  %v1123_v28 = vpop.f32.mrf.mxu0 }
 0x17b   : > { %v2909_v29 = vpop.f32.mrf.mxu1  ;;  %v1125_v30 = vpop.f32.mrf.mxu0 }
 0x17d   : > { %v2911_v31 = vpop.f32.mrf.mxu1  ;;  %v2913_v32 = vpop.f32.mrf.mxu0 }
 0x17f   : > { %v2915_v33 = vpop.f32.mrf.mxu1  ;;  %v2917_v34 = vpop.f32.mrf.mxu0 }
 0x181   : > { %v2919_v35 = vpop.f32.mrf.mxu0  ;;  %v2921_v36 = vpop.f32.mrf.mxu1 }
 0x183   : > { %v2923_v37 = vpop.f32.mrf.mxu0  ;;  %v2925_v38 = vpop.f32.mrf.mxu1 }
 0x185   : > { %v2927_v39 = vpop.f32.mrf.mxu0  ;;  %v2929_v40 = vpop.f32.mrf.mxu1 }
 0x186   : > { %3068 = vst [vmem:[#allocation2_spill] sm:$0xff] %v2929_v40 }
 0x187   : > { %v2931_v41 = vpop.f32.mrf.mxu0  ;;  %v2933_v42 = vpop.f32.mrf.mxu1 }
 0x188   : > { %3069 = vst [vmem:[#allocation3_spill] sm:$0xff] %v2931_v41  ;;  %3070 = vst [vmem:[#allocation4_spill] sm:$0xff] %v2933_v42 }
 0x189   : > { %v1350_v43 = vpop.f32.mrf.mxu1  ;;  %v2935_v0 = vpop.f32.mrf.mxu0 }
 0x18b   : > { %v1352_v44 = vpop.f32.mrf.mxu1  ;;  %v2937_v45 = vpop.f32.mrf.mxu0 }
 0x18c   : > { %3071 = vst [vmem:[#allocation5_spill] sm:$0xff] %v2937_v45 }
 0x18d   : > { %v1356_v46 = vpop.f32.mrf.mxu1  ;;  %v2939_v47 = vpop.f32.mrf.mxu0 }
 0x18e   : > { %3072 = vst [vmem:[#allocation6_spill] sm:$0xff] %v2939_v47 }
 0x18f   : > { %v2941_v50 = vpop.f32.mrf.mxu1  ;;  %v2943_v51 = vpop.f32.mrf.mxu0 }
 0x190   : > { %3073 = vst [vmem:[#allocation7_spill] sm:$0xff] %v2943_v51 }
 0x191   : > { %v2945_v54 = vpop.f32.mrf.mxu1  ;;  %v1577_v55 = vpop.f32.mrf.mxu0 }
 0x193   : > { %v2947_v58 = vpop.f32.mrf.mxu1  ;;  %v1579_v59 = vpop.f32.mrf.mxu0 }
 0x194   : > { %3074 = vst [vmem:[#allocation8_spill] sm:$0xff] %v2947_v58 }
 0x195   : > { %v2949_v62 = vpop.f32.mrf.mxu1  ;;  %v1583_v2 = vpop.f32.mrf.mxu0 }
 0x196   : > { %3075 = vst [vmem:[#allocation9_spill] sm:$0xff] %v2949_v62  ;;  %v777_v62 = vadd.f32 %v2865_v63, %v2849_v48  ;;  %v783_v48 = vadd.f32 %v2881_v11, %v2867_v1  ;;  %v788_v1 = vadd.f32 %v2891_v16, %v2859_v57 }
 0x197   : > { %v2951_v5 = vpop.f32.mrf.mxu1  ;;  %v2953_v8 = vpop.f32.mrf.mxu0 }
 0x198   : > { %3076 = vst [vmem:[#allocation10_spill] sm:$0xff] %v2951_v5  ;;  %3077 = vst [vmem:[#allocation11_spill] sm:$0xff] %v2953_v8  ;;  %v1004_v8 = vadd.f32 %v896_v19, %v777_v62 }
 0x199   : > { %v2955_v42 = vpop.f32.mrf.mxu0  ;;  %v2957_v47 = vpop.f32.mrf.mxu1 }
 0x19a   : > { %3078 = vst [vmem:[#allocation12_spill] sm:$0xff] %v2955_v42  ;;  %3079 = vst [vmem:[#allocation13_spill] sm:$0xff] %v2957_v47  ;;  %v778_v42 = vadd.f32 %v2869_v3, %v2853_v52  ;;  %v784_v52 = vadd.f32 %v2885_v13, %v2871_v4  ;;  %v786_v3 = vadd.f32 %v2889_v15, %v2875_v7 }
 0x19b   : > { %v2959_v45 = vpop.f32.mrf.mxu0  ;;  %v2961_v51 = vpop.f32.mrf.mxu1  ;;  %v785_v4 = vadd.f32 %v2895_v18, %v2863_v61  ;;  %v1010_v61 = vadd.f32 %v2907_v27, %v783_v48 }
 0x19c   : > { %3080 = vst [vmem:[#allocation14_spill] sm:$0xff] %v2959_v45  ;;  %3081 = vst [vmem:[#allocation15_spill] sm:$0xff] %v2961_v51  ;;  %v780_v45 = vadd.f32 %v2873_v6, %v2857_v56  ;;  %v1005_v63 = vadd.f32 %v898_v21, %v778_v42  ;;  %v779_v56 = vadd.f32 %v2887_v14, %v2855_v53 }
 0x19d   : > { %v2963_v41 = vpop.f32.mrf.mxu0  ;;  %v2965_v40 = vpop.f32.mrf.mxu1  ;;  %v1015_v21 = vadd.f32 %v2901_v24, %v788_v1  ;;  %v1237_v24 = vadd.f32 %v2919_v35, %v1010_v61  ;;  %v3092_v1 = vld [vmem:[#allocation4_spill] sm:$0xff] }
 0x19e   : > { %3082 = vst [vmem:[#allocation16_spill] sm:$0xff] %v2965_v40  ;;  %v781_v40 = vadd.f32 %v2877_v9, %v2861_v60  ;;  %v1007_v9 = vadd.f32 %v902_v23, %v780_v45  ;;  %v1232_v11 = vadd.f32 %v1125_v30, %v1005_v63  ;;  %v1013_v30 = vadd.f32 %v2911_v31, %v786_v3 }
 0x19f   : > { %v2969_v58 = vpop.f32.mrf.mxu0  ;;  %v2971_v5 = vpop.f32.mrf.mxu1 }
 0x1a0   : > { %3083 = vst [vmem:[#allocation17_spill] sm:$0xff] %v2969_v58  ;;  %3084 = vst [vmem:[#allocation18_spill] sm:$0xff] %v2971_v5  ;;  %v1231_v58 = vadd.f32 %v1123_v28, %v1004_v8  ;;  %v782_v5 = vadd.f32 %v2883_v12, %v2851_v49  ;;  %v787_v49 = vadd.f32 %v2893_v17, %v2879_v10  ;;  %v3089_v8 = vld [vmem:[#allocation8_spill] sm:$0xff] }
 0x1a1   : > { %v1804_v47 = vpop.f32.mrf.mxu1  ;;  %v2977_v51 = vpop.f32.mrf.mxu0  ;;  %v1006_v12 = vadd.f32 %v2899_v22, %v779_v56  ;;  %v1008_v14 = vadd.f32 %v2903_v25, %v781_v40  ;;  %v1234_v57 = vadd.f32 %v2913_v32, %v1007_v9  ;;  %v1459_v15 = vadd.f32 %v1352_v44, %v1232_v11  ;;  %v3090_v63 = vld [vmem:[#allocation12_spill] sm:$0xff]  ;;  %v3091_v56 = vld [vmem:[#allocation13_spill] sm:$0xff]  ;;  %v3093_v11 = vld [vmem:[#allocation6_spill] sm:$0xff] }
 0x1a2   : > { %v1458_v19 = vadd.f32 %v1350_v43, %v1231_v58  ;;  %v1009_v53 = vadd.f32 %v2897_v20, %v782_v5  ;;  %v1012_v10 = vadd.f32 %v2905_v26, %v785_v4  ;;  %v1011_v17 = vadd.f32 %v2909_v29, %v784_v52  ;;  %v3088_v5 = vld [vmem:[#allocation5_spill] sm:$0xff] }
 0x1a3   : > { %v1806_v6 = vpop.f32.mrf.mxu1  ;;  %v2991_v60 = vpop.f32.mrf.mxu0  ;;  %v1235_v22 = vadd.f32 %v2917_v34, %v1008_v14  ;;  %v1461_v23 = vadd.f32 %v1356_v46, %v1234_v57  ;;  %v1686_v28 = vadd.f32 %v1579_v59, %v1459_v15  ;;  %v1014_v32 = vadd.f32 %v2915_v33, %v787_v49  ;;  %v3086_v59 = vld [vmem:[#allocation2_spill] sm:$0xff]  ;;  %v3094_v49 = vld [vmem:[#allocation9_spill] sm:$0xff]  ;;  %v3096_v57 = vld [vmem:[#allocation15_spill] sm:$0xff] }
 0x1a4   : > { %v1685_v16 = vadd.f32 %v1577_v55, %v1458_v19  ;;  %v1236_v26 = vadd.f32 %v2921_v36, %v1009_v53  ;;  %v1238_v31 = vadd.f32 %v2923_v37, %v1011_v17  ;;  %v1233_v33 = vadd.f32 %v2925_v38, %v1006_v12  ;;  %v3095_v53 = vld [vmem:[#allocation14_spill] sm:$0xff]  ;;  %v3097_v17 = vld [vmem:[#allocation7_spill] sm:$0xff] }
 0x1a5   : > { %v1810_v7 = vpop.f32.mrf.mxu1  ;;  %v3001_v13 = vpop.f32.mrf.mxu0  ;;  %v1462_v29 = vadd.f32 %v2941_v50, %v1235_v22  ;;  %v1688_v34 = vadd.f32 %v1583_v2, %v1461_v23  ;;  %v1913_v42 = vadd.f32 %v1806_v6, %v1686_v28  ;;  %v1240_v35 = vadd.f32 %v2927_v39, %v1013_v30  ;;  %v3087_v2 = vld [vmem:[#allocation3_spill] sm:$0xff]  ;;  %v3098_v22 = vld [vmem:[#allocation10_spill] sm:$0xff]  ;;  %v3099_v28 = vld [vmem:[#allocation16_spill] sm:$0xff] }
 0x1a6   : > { %v1912_v25 = vadd.f32 %v1804_v47, %v1685_v16  ;;  %v1463_v36 = vadd.f32 %v2935_v0, %v1236_v26  ;;  %v1464_v46 = vadd.f32 %v2945_v54, %v1237_v24  ;;  %v3085_v47 = vld [vmem:[#allocation11_spill] sm:$0xff]  ;;  %v1242_v62 = vadd.f32 %v3086_v59, %v1015_v21 }
 0x1a7   : > { %v1812_v18 = vpop.f32.mrf.mxu1  ;;  %v3010_v20 = vpop.f32.mrf.mxu0  ;;  %v1689_v55 = vadd.f32 %v3085_v47, %v1462_v29  ;;  %v1915_v58 = vadd.f32 %v1810_v7, %v1688_v34  ;;  %v1241_v37 = vadd.f32 %v3087_v2, %v1014_v32  ;;  %v1460_v38 = vadd.f32 %v3088_v5, %v1233_v33  ;;  %v3101_v34 = vld [vmem:[#allocation18_spill] sm:$0xff] }
 0x1a8   : > { %v1465_v39 = vadd.f32 %v3089_v8, %v1238_v31  ;;  %v1691_v52 = vadd.f32 %v3090_v63, %v1464_v46  ;;  %v1690_v54 = vadd.f32 %v3091_v56, %v1463_v36  ;;  %v1239_v9 = vadd.f32 %v3092_v1, %v1012_v10 }
 0x1a9   : > { %v1816_v40 = vpop.f32.mrf.mxu1  ;;  %v2031_v27 = vpop.f32.mrf.mxu0  ;;  %v1916_v3 = vadd.f32 %v1812_v18, %v1689_v55  ;;  %v1469_v19 = vadd.f32 %v3093_v11, %v1242_v62  ;;  %v1467_v4 = vadd.f32 %v3094_v49, %v1240_v35  ;;  %v1687_v15 = vadd.f32 %v3096_v57, %v1460_v38 }
 0x1aa   : > { %v2139_v43 = vadd.f32 %v2031_v27, %v1912_v25  ;;  %v1692_v12 = vadd.f32 %v3095_v53, %v1465_v39  ;;  %v1917_v16 = vadd.f32 %v2977_v51, %v1690_v54  ;;  %v1918_v21 = vadd.f32 %v1816_v40, %v1691_v52  ;;  %v3100_v27 = vld [vmem:[#allocation17_spill] sm:$0xff] }
 0x1ab   : > { %v1818_v44 = vpop.f32.mrf.mxu1  ;;  %v2033_v45 = vpop.f32.mrf.mxu0  ;;  %v1466_v18 = vadd.f32 %v3097_v17, %v1239_v9  ;;  %v1468_v10 = vadd.f32 %v3098_v22, %v1241_v37  ;;  %v1694_v23 = vadd.f32 %v2963_v41, %v1467_v4  ;;  %v1696_v25 = vadd.f32 %v3099_v28, %v1469_v19 }
 0x1ac   : > { %2151 = vst [vmem:[%s3020_s19] sm:$0xff] %v2139_v43  ;;  %v2140_v50 = vadd.f32 %v2033_v45, %v1913_v42  ;;  %v1914_v24 = vadd.f32 %v2991_v60, %v1687_v15  ;;  %v1919_v26 = vadd.f32 %v1818_v44, %v1692_v12 }
 0x1ad   : > { %v1822_v48 = vpop.f32.mrf.mxu1  ;;  %v2037_v0 = vpop.f32.mrf.mxu0  ;;  %v1695_v29 = vadd.f32 %v3100_v27, %v1468_v10  ;;  %v1693_v42 = vadd.f32 %v3101_v34, %v1466_v18  ;;  %v1923_v41 = vadd.f32 %v3001_v13, %v1696_v25 }
 0x1ae   : > { %2152 = vst [vmem:[%s3020_s19 + $0x8] sm:$0xff] %v2140_v50  ;;  %v2142_v6 = vadd.f32 %v2037_v0, %v1915_v58  ;;  %v1921_v33 = vadd.f32 %v1822_v48, %v1694_v23 }
 0x1af   : > { %v1824_v7 = vpop.f32.mrf.mxu1  ;;  %v2039_v14 = vpop.f32.mrf.mxu0  ;;  %v1920_v45 = vadd.f32 %v3010_v20, %v1693_v42 }
 0x1b0   : > { %2154 = vst [vmem:[%s3020_s19 + $0x18] sm:$0xff] %v2142_v6  ;;  %v2143_v61 = vadd.f32 %v2039_v14, %v1916_v3  ;;  %v1922_v46 = vadd.f32 %v1824_v7, %v1695_v29 }
 0x1b1   : > { %v2043_v30 = vpop.f32.mrf.mxu0  ;;  %v2473_v32 = vpop.f32.mrf.mxu1 }
 0x1b2   : > { %2155 = vst [vmem:[%s3020_s19 + $0x20] sm:$0xff] %v2143_v61  ;;  %v2145_v51 = vadd.f32 %v2043_v30, %v1918_v21  ;;  %v2144_v40 = vadd.f32 %v2473_v32, %v1917_v16 }
 0x1b3   : > { %v2045_v43 = vpop.f32.mrf.mxu0  ;;  %v2120_v31 = vpop.f32.mrf.mxu1 }
 0x1b4   : > { %2157 = vst [vmem:[%s3020_s19 + $0x30] sm:$0xff] %v2145_v51  ;;  %2156 = vst [vmem:[%s3020_s19 + $0x28] sm:$0xff] %v2144_v40  ;;  %v2146_v60 = vadd.f32 %v2045_v43, %v1919_v26  ;;  %v2141_v35 = vadd.f32 %v2120_v31, %v1914_v24 }
 0x1b5   : > { %v2049_v36 = vpop.f32.mrf.mxu0  ;;  %v2476_v44 = vpop.f32.mrf.mxu1 }
 0x1b6   : > { %2158 = vst [vmem:[%s3020_s19 + $0x38] sm:$0xff] %v2146_v60  ;;  %2153 = vst [vmem:[%s3020_s19 + $0x10] sm:$0xff] %v2141_v35  ;;  %v2148_v47 = vadd.f32 %v2049_v36, %v1921_v33  ;;  %v2150_v55 = vadd.f32 %v2476_v44, %v1923_v41 }
 0x1b7   : > { %v2051_v58 = vpop.f32.mrf.mxu0  ;;  %v2130_v13 = vpop.f32.mrf.mxu1 }
 0x1b8   : > { %2160 = vst [vmem:[%s3020_s19 + $0x48] sm:$0xf] %v2148_v47  ;;  %2162 = vst [vmem:[%s3020_s19 + $0x58] sm:$0xf] %v2150_v55  ;;  %v2149_v50 = vadd.f32 %v2051_v58, %v1922_v46  ;;  %v2147_v59 = vadd.f32 %v2130_v13, %v1920_v45 }
 0x1ba   : > { %2161 = vst [vmem:[%s3020_s19 + $0x50] sm:$0xf] %v2149_v50  ;;  %2159 = vst [vmem:[%s3020_s19 + $0x40] sm:$0xff] %v2147_v59 }
 0x1bb PF: > { %s12_s9 = sadd.s32 1, %s2505_s9  }
 0x1bc   : > { %p9_p4 = scmp.ge.s32.totalorder %s12_s9, 4  }
 0x1be   :  { %11 = sbr.rel (!%p9_p4) target bundleno = 1 (0x1), region = 66 }

</bundles_post_ra>
